<compile_context>
chip_gen: v5e
topology: v5e:2x2
jax: 0.10.0
libtpu: 0.0.40
codegen_flags: <defaults>
</compile_context>

<pallas_src>
import functools
import math

import jax
import jax.numpy as jnp
from jax.experimental import pallas as pl
from jax.experimental.pallas import tpu as pltpu

_AMP = 1.0 / math.sqrt(2.0 * math.pi)
_LOG_INV_AMP = 0.5 * math.log(2.0 * math.pi)     # log(1 / amp) = log(sqrt(2*pi))
_SQRT2 = math.sqrt(2.0)

_TARGET_TILE_ELEMS = 512 * 1024                  # ~2 MiB of f32 per input tile
_SMALL_INPUT_THRESHOLD = 1 << 20                 # below this, fused XLA wins
_OUT_LANES = 128                                 # lane width of the per-core partial block


def _sublane_multiple(dtype) -> int:
    # 32-bit -> 8 sublanes, 16-bit -> 16, 8-bit -> 32 (packed-dtype min tile).
    return max(8, 32 // jnp.dtype(dtype).itemsize)


def _rle_logq_kernel(pred_ref, sigma_ref, gt_ref, w_ref, out_ref,
                     loss_acc_ref, w_acc_ref, *,
                     batch, tile_rows, steps_per_core, needs_mask):
    step = pl.program_id(1)

    @pl.when(step == 0)
    def _init():
        loss_acc_ref[...] = jnp.zeros_like(loss_acc_ref)
        w_acc_ref[...] = jnp.zeros_like(w_acc_ref)

    # Cast after load: inputs stay in native dtype (e.g. bf16) in HBM/VMEM,
    # halving DMA bytes for 16-bit inputs.
    pred = pred_ref[...].astype(jnp.float32)
    sigma = sigma_ref[...].astype(jnp.float32)
    gt = gt_ref[...].astype(jnp.float32)
    w = w_ref[...].astype(jnp.float32)

    # 1 / (sqrt(2)*sigma + 1e-9): EUP approx reciprocal + one Newton-Raphson
    # step (two FMAs) -> ~f32 accuracy without the full-precision divide.
    den = _SQRT2 * sigma + 1e-9
    inv = pl.reciprocal(den, approx=True)
    inv = inv * (2.0 - den * inv)

    # logQ without the +log(1/amp) constant; that constant is added once per
    # core in the wrapper as log(1/amp) * sum(w) (saves a VPU add per element).
    loss = (jnp.log(sigma) + jnp.abs(gt - pred) * inv) * w

    if needs_mask:
        # Ragged tail / duplicated (clamped) blocks: zero out rows >= batch.
        core = pl.program_id(0)
        row0 = (core * steps_per_core + step) * tile_rows
        rows = jax.lax.broadcasted_iota(jnp.int32, loss.shape, 0) + row0
        valid = rows < batch
        loss = jnp.where(valid, loss, 0.0)
        w = jnp.where(valid, w, 0.0)

    # Deferred reduction: sublane-only partial sums into VMEM each step; the
    # cross-lane reduce happens once per core at finalize.
    loss_acc_ref[...] += jnp.sum(loss, axis=0, keepdims=True)
    w_acc_ref[...] += jnp.sum(w, axis=0, keepdims=True)

    @pl.when(step == steps_per_core - 1)
    def _finalize():
        loss_tot = jnp.sum(loss_acc_ref[...])
        w_tot = jnp.sum(w_acc_ref[...])
        sel = jax.lax.broadcasted_iota(jnp.int32, (1, 2, _OUT_LANES), 1) == 0
        out_ref[...] = jnp.where(sel, loss_tot, w_tot)


def _fused_small(pred, sigma, gt, w, batch, size_average):
    """Fused XLA path for small inputs (a pallas_call is pure fixed cost there)."""
    p = pred.astype(jnp.float32)
    s = sigma.astype(jnp.float32)
    g = gt.astype(jnp.float32)
    ww = w.astype(jnp.float32)
    logq = jnp.log(s / _AMP) + jnp.abs(g - p) / (_SQRT2 * s + 1e-9)
    total = jnp.sum(logq * ww)
    if size_average:
        return jnp.where(jnp.sum(ww) > 0.0, total / jnp.float32(batch), total)
    return total


def rle_loss_logq(pred_jts, sigma, target_uv, target_uv_weight, *,
                  size_average=True, num_cores=2, max_tile_rows=None,
                  small_input_threshold=_SMALL_INPUT_THRESHOLD):
    """Pallas implementation of RLELoss_logQ.forward.

    pred_jts, sigma: (B, K, D); target_uv / target_uv_weight reshapeable to that.
    Returns a scalar float32 loss.
    """
    batch = pred_jts.shape[0]
    feat = math.prod(pred_jts.shape[1:])
    total = batch * feat

    # Collapse to (B, F).  This mirrors the module's labels.reshape(pred_jts.shape)
    # and is a metadata-only collapse of contiguous trailing dims (no pad slab,
    # no extra HBM streaming pass like the old _to_tiles relayout).
    pred2d = jnp.reshape(pred_jts, (batch, feat))
    sigma2d = jnp.reshape(sigma, (batch, feat))
    gt2d = jnp.reshape(target_uv, (batch, feat))
    w2d = jnp.reshape(target_uv_weight, (batch, feat))

    sub = max(_sublane_multiple(x.dtype) for x in (pred2d, sigma2d, gt2d, w2d))

    # Small-input fallback, plus a guard for pathologically wide rows where even
    # a minimum-height tile would blow the VMEM budget.
    if total < small_input_threshold or sub * feat > 2 * _TARGET_TILE_ELEMS:
        return _fused_small(pred2d, sigma2d, gt2d, w2d, batch, size_average)

    # Row-tile size: ~2 MiB of f32-equivalent input per block, rounded to the
    # packed-dtype sublane multiple (full batch is always legal as a block).
    tile_rows = _TARGET_TILE_ELEMS // feat
    if max_tile_rows is not None:
        tile_rows = min(tile_rows, max_tile_rows)
    tile_rows = max(sub, (tile_rows // sub) * sub)
    if tile_rows >= batch:
        tile_rows = batch
    num_row_blocks = -(-batch // tile_rows)

    # Leading "parallel" axis: on v7x each TensorCore streams half the row
    # blocks; on v5e/v6e (1 TC) it is just a short sequential outer loop.
    cores = max(1, min(num_cores, num_row_blocks))
    steps_per_core = -(-num_row_blocks // cores)
    needs_mask = (cores * steps_per_core * tile_rows) != batch

    last_block = num_row_blocks - 1

    def row_map(c, i):
        # Clamp so duplicated / out-of-range blocks stay in bounds for the DMA;
        # the in-kernel mask (computed from the *unclamped* index) zeroes them.
        return (jnp.minimum(c * steps_per_core + i, last_block), 0)

    kernel = functools.partial(
        _rle_logq_kernel,
        batch=batch, tile_rows=tile_rows,
        steps_per_core=steps_per_core, needs_mask=needs_mask)

    in_spec = pl.BlockSpec((tile_rows, feat), row_map)

    parts = pl.pallas_call(
        kernel,
        out_shape=jax.ShapeDtypeStruct((cores, 2, _OUT_LANES), jnp.float32),
        grid_spec=pltpu.PrefetchScalarGridSpec(
            num_scalar_prefetch=0,
            grid=(cores, steps_per_core),
            in_specs=[in_spec, in_spec, in_spec, in_spec],
            out_specs=pl.BlockSpec((1, 2, _OUT_LANES), lambda c, i: (c, 0, 0)),
            scratch_shapes=[pltpu.VMEM((1, feat), jnp.float32),
                            pltpu.VMEM((1, feat), jnp.float32)],
        ),
        compiler_params=pltpu.CompilerParams(
            dimension_semantics=("parallel", "arbitrary"),
            vmem_limit_bytes=48 * 1024 * 1024,
        ),
    )(pred2d, sigma2d, gt2d, w2d)

    # Combine per-core partials; gate + /batch are scalar XLA ops in the wrapper.
    loss_sum = jnp.sum(parts[:, 0, 0])
    w_sum = jnp.sum(parts[:, 1, 0])
    total_loss = loss_sum + jnp.float32(_LOG_INV_AMP) * w_sum
    if size_average:
        return jnp.where(w_sum > 0.0, total_loss / jnp.float32(batch), total_loss)
    return total_loss


def _reference(pred_jts, sigma, target_uv, target_uv_weight, size_average=True):
    gt_uv = jnp.reshape(target_uv, pred_jts.shape).astype(jnp.float32)
    gt_w = jnp.reshape(target_uv_weight, pred_jts.shape).astype(jnp.float32)
    p = pred_jts.astype(jnp.float32)
    s = sigma.astype(jnp.float32)
    logq = jnp.log(s / _AMP) + jnp.abs(gt_uv - p) / (_SQRT2 * s + 1e-9)
    loss = logq * gt_w
    total = jnp.sum(loss)
    if size_average:
        return jnp.where(jnp.sum(gt_w) > 0, total / pred_jts.shape[0], total)
    return total


if __name__ == "__main__":
    key = jax.random.PRNGKey(0)
    k1, k2, k3, k4 = jax.random.split(key, 4)

    # --- Typical small pose-regression shapes: (B, K, D) = (2, 8, 2) ---
    B, K, D = 2, 8, 2
    pred = jax.random.normal(k1, (B, K, D), dtype=jnp.float32)
    sigma = jax.nn.softplus(jax.random.normal(k2, (B, K, D), dtype=jnp.float32)) + 0.1
    gt = jax.random.normal(k3, (B, K * D), dtype=jnp.float32)
    w = (jax.random.uniform(k4, (B, K * D)) > 0.3).astype(jnp.float32)

    out = rle_loss_logq(pred, sigma, gt, w, size_average=True,
                        small_input_threshold=0)          # force the Pallas path
    out = jax.block_until_ready(out)
    ref = _reference(pred, sigma, gt, w, size_average=True)
    assert jnp.allclose(out, ref, rtol=2e-5, atol=1e-5), (out, ref)

    out_ns = rle_loss_logq(pred, sigma, gt, w, size_average=False,
                           small_input_threshold=0)
    out_ns = jax.block_until_ready(out_ns)
    ref_ns = _reference(pred, sigma, gt, w, size_average=False)
    assert jnp.allclose(out_ns, ref_ns, rtol=2e-5, atol=1e-5), (out_ns, ref_ns)

    # --- Small-input auto fallback (fused XLA path) agrees as well. ---
    out_fb = jax.block_until_ready(rle_loss_logq(pred, sigma, gt, w))
    assert jnp.allclose(out_fb, ref, rtol=2e-5, atol=1e-5), (out_fb, ref)

    # --- Ragged multi-step, two-"core" grid with tail masking: (37, 17, 2) ---
    j1, j2, j3, j4 = jax.random.split(jax.random.PRNGKey(1), 4)
    B2, K2, D2 = 37, 17, 2
    pred2 = jax.random.normal(j1, (B2, K2, D2), dtype=jnp.float32)
    sigma2 = jax.nn.softplus(jax.random.normal(j2, (B2, K2, D2), dtype=jnp.float32)) + 0.1
    gt2 = jax.random.normal(j3, (B2, K2 * D2), dtype=jnp.float32)
    w2 = (jax.random.uniform(j4, (B2, K2 * D2)) > 0.3).astype(jnp.float32)

    out2 = rle_loss_logq(pred2, sigma2, gt2, w2, size_average=True,
                         small_input_threshold=0, max_tile_rows=8, num_cores=2)
    out2 = jax.block_until_ready(out2)
    ref2 = _reference(pred2, sigma2, gt2, w2, size_average=True)
    assert jnp.allclose(out2, ref2, rtol=2e-5, atol=1e-5), (out2, ref2)

    # --- bf16 inputs: native-dtype DMA + 16-sublane tiles: (64, 32, 2) ---
    m1, m2, m3, m4 = jax.random.split(jax.random.PRNGKey(2), 4)
    B3, K3, D3 = 64, 32, 2
    pred3 = jax.random.normal(m1, (B3, K3, D3), dtype=jnp.bfloat16)
    sigma3 = (jax.nn.softplus(jax.random.normal(m2, (B3, K3, D3))) + 0.1).astype(jnp.bfloat16)
    gt3 = jax.random.normal(m3, (B3, K3 * D3), dtype=jnp.bfloat16)
    w3 = (jax.random.uniform(m4, (B3, K3 * D3)) > 0.3).astype(jnp.bfloat16)

    out3 = rle_loss_logq(pred3, sigma3, gt3, w3, size_average=True,
                         small_input_threshold=0, max_tile_rows=16, num_cores=2)
    out3 = jax.block_until_ready(out3)
    ref3 = _reference(pred3, sigma3, gt3, w3, size_average=True)
    assert jnp.allclose(out3, ref3, rtol=2e-5, atol=1e-5), (out3, ref3)

    print("KERNEL_OK")
</pallas_src>

<mosaic_0001>
module attributes {stable_mosaic.version = 11 : i64} {
  func.func @_rle_logq_kernel(%arg0: i32, %arg1: i32, %arg2: memref<2x16xf32, #tpu.memory_space<vmem>>, %arg3: memref<2x16xf32, #tpu.memory_space<vmem>>, %arg4: memref<2x16xf32, #tpu.memory_space<vmem>>, %arg5: memref<2x16xf32, #tpu.memory_space<vmem>>, %arg6: memref<1x2x128xf32, #tpu.memory_space<vmem>>, %arg7: memref<1x16xf32, #tpu.memory_space<vmem>>, %arg8: memref<1x16xf32, #tpu.memory_space<vmem>>) attributes {dimension_semantics = [#tpu.dimension_semantics<parallel>, #tpu.dimension_semantics<arbitrary>], iteration_bounds = array<i64: 1, 1>, scalar_prefetch = 0 : i64, scratch_operands = 2 : i64, tpu.core_type = #tpu.core_type<tc>, window_params = [{transform_indices = @transform_0, window_bounds = array<i64: 2, 16>}, {transform_indices = @transform_1, window_bounds = array<i64: 2, 16>}, {transform_indices = @transform_2, window_bounds = array<i64: 2, 16>}, {transform_indices = @transform_3, window_bounds = array<i64: 2, 16>}, {transform_indices = @transform_4, window_bounds = array<i64: 1, 2, 128>}]} {
    %c0_i32 = arith.constant 0 : i32
    %0 = arith.cmpi eq, %arg1, %c0_i32 : i32
    %1 = arith.extui %0 : i1 to i32
    %c0_i32_0 = arith.constant 0 : i32
    %2 = arith.cmpi ne, %1, %c0_i32_0 : i32
    scf.if %2 {
      %cst_22 = arith.constant 0.000000e+00 : f32
      %35 = vector.broadcast %cst_22 : f32 to vector<1x16xf32>
      %c0_23 = arith.constant 0 : index
      %c0_24 = arith.constant 0 : index
      %36 = vector.load %arg7[%c0_23, %c0_24] : memref<1x16xf32, #tpu.memory_space<vmem>>, vector<1x16xf32>
      tpu.vector_store %arg7[%c0_23, %c0_24], %35 {strides = array<i32>} : memref<1x16xf32, #tpu.memory_space<vmem>>, vector<1x16xf32>,
      %cst_25 = arith.constant 0.000000e+00 : f32
      %37 = vector.broadcast %cst_25 : f32 to vector<1x16xf32>
      %c0_26 = arith.constant 0 : index
      %c0_27 = arith.constant 0 : index
      %38 = vector.load %arg8[%c0_26, %c0_27] : memref<1x16xf32, #tpu.memory_space<vmem>>, vector<1x16xf32>
      tpu.vector_store %arg8[%c0_26, %c0_27], %37 {strides = array<i32>} : memref<1x16xf32, #tpu.memory_space<vmem>>, vector<1x16xf32>,
    } else {
    }
    %c0 = arith.constant 0 : index
    %c0_1 = arith.constant 0 : index
    %3 = vector.load %arg2[%c0, %c0_1] : memref<2x16xf32, #tpu.memory_space<vmem>>, vector<2x16xf32>
    %c0_2 = arith.constant 0 : index
    %c0_3 = arith.constant 0 : index
    %4 = vector.load %arg3[%c0_2, %c0_3] : memref<2x16xf32, #tpu.memory_space<vmem>>, vector<2x16xf32>
    %c0_4 = arith.constant 0 : index
    %c0_5 = arith.constant 0 : index
    %5 = vector.load %arg4[%c0_4, %c0_5] : memref<2x16xf32, #tpu.memory_space<vmem>>, vector<2x16xf32>
    %c0_6 = arith.constant 0 : index
    %c0_7 = arith.constant 0 : index
    %6 = vector.load %arg5[%c0_6, %c0_7] : memref<2x16xf32, #tpu.memory_space<vmem>>, vector<2x16xf32>
    %cst = arith.constant 1.41421354 : f32
    %7 = vector.broadcast %cst : f32 to vector<2x16xf32>
    %8 = arith.mulf %7, %4 : vector<2x16xf32>
    %cst_8 = arith.constant 9.99999971E-10 : f32
    %9 = vector.broadcast %cst_8 : f32 to vector<2x16xf32>
    %10 = arith.addf %8, %9 : vector<2x16xf32>
    %11 = tpu.reciprocal %10 {approx = true} : vector<2x16xf32> -> vector<2x16xf32>
    %12 = arith.mulf %10, %11 : vector<2x16xf32>
    %cst_9 = arith.constant 2.000000e+00 : f32
    %13 = vector.broadcast %cst_9 : f32 to vector<2x16xf32>
    %14 = arith.subf %13, %12 : vector<2x16xf32>
    %15 = arith.mulf %11, %14 : vector<2x16xf32>
    %16 = math.log %4 : vector<2x16xf32>
    %17 = arith.subf %5, %3 : vector<2x16xf32>
    %18 = math.absf %17 : vector<2x16xf32>
    %19 = arith.mulf %18, %15 : vector<2x16xf32>
    %20 = arith.addf %16, %19 : vector<2x16xf32>
    %21 = arith.mulf %20, %6 : vector<2x16xf32>
    %c0_10 = arith.constant 0 : index
    %c0_11 = arith.constant 0 : index
    %22 = vector.load %arg7[%c0_10, %c0_11] : memref<1x16xf32, #tpu.memory_space<vmem>>, vector<1x16xf32>
    %cst_12 = arith.constant dense<0.000000e+00> : vector<16xf32>
    %23 = vector.multi_reduction <add>, %21, %cst_12 [0] : vector<2x16xf32> to vector<16xf32>
    %24 = vector.shape_cast %23 : vector<16xf32> to vector<1x16xf32>
    %25 = arith.addf %22, %24 : vector<1x16xf32>
    %c0_13 = arith.constant 0 : index
    %c0_14 = arith.constant 0 : index
    %26 = vector.load %arg7[%c0_13, %c0_14] : memref<1x16xf32, #tpu.memory_space<vmem>>, vector<1x16xf32>
    tpu.vector_store %arg7[%c0_13, %c0_14], %25 {strides = array<i32>} : memref<1x16xf32, #tpu.memory_space<vmem>>, vector<1x16xf32>,
    %c0_15 = arith.constant 0 : index
    %c0_16 = arith.constant 0 : index
    %27 = vector.load %arg8[%c0_15, %c0_16] : memref<1x16xf32, #tpu.memory_space<vmem>>, vector<1x16xf32>
    %cst_17 = arith.constant dense<0.000000e+00> : vector<16xf32>
    %28 = vector.multi_reduction <add>, %6, %cst_17 [0] : vector<2x16xf32> to vector<16xf32>
    %29 = vector.shape_cast %28 : vector<16xf32> to vector<1x16xf32>
    %30 = arith.addf %27, %29 : vector<1x16xf32>
    %c0_18 = arith.constant 0 : index
    %c0_19 = arith.constant 0 : index
    %31 = vector.load %arg8[%c0_18, %c0_19] : memref<1x16xf32, #tpu.memory_space<vmem>>, vector<1x16xf32>
    tpu.vector_store %arg8[%c0_18, %c0_19], %30 {strides = array<i32>} : memref<1x16xf32, #tpu.memory_space<vmem>>, vector<1x16xf32>,
    %c0_i32_20 = arith.constant 0 : i32
    %32 = arith.cmpi eq, %arg1, %c0_i32_20 : i32
    %33 = arith.extui %32 : i1 to i32
    %c0_i32_21 = arith.constant 0 : i32
    %34 = arith.cmpi ne, %33, %c0_i32_21 : i32
    scf.if %34 {
      %c0_22 = arith.constant 0 : index
      %c0_23 = arith.constant 0 : index
      %35 = vector.load %arg7[%c0_22, %c0_23] : memref<1x16xf32, #tpu.memory_space<vmem>>, vector<1x16xf32>
      %36 = vector.shape_cast %35 : vector<1x16xf32> to vector<1x1x16xf32>
      %cst_24 = arith.constant dense<0.000000e+00> : vector<1xf32>
      %37 = vector.multi_reduction <add>, %36, %cst_24 [1, 2] : vector<1x1x16xf32> to vector<1xf32>
      %38 = vector.shape_cast %37 : vector<1xf32> to vector<1x1x1xf32>
      %39 = vector.extract %38[0, 0, 0] : f32 from vector<1x1x1xf32>
      %c0_25 = arith.constant 0 : index
      %c0_26 = arith.constant 0 : index
      %40 = vector.load %arg8[%c0_25, %c0_26] : memref<1x16xf32, #tpu.memory_space<vmem>>, vector<1x16xf32>
      %41 = vector.shape_cast %40 : vector<1x16xf32> to vector<1x1x16xf32>
      %cst_27 = arith.constant dense<0.000000e+00> : vector<1xf32>
      %42 = vector.multi_reduction <add>, %41, %cst_27 [1, 2] : vector<1x1x16xf32> to vector<1xf32>
      %43 = vector.shape_cast %42 : vector<1xf32> to vector<1x1x1xf32>
      %44 = vector.extract %43[0, 0, 0] : f32 from vector<1x1x1xf32>
      %45 = tpu.iota {dimensions = array<i32: 1>} : vector<1x2x128xi32>
      %c0_i32_28 = arith.constant 0 : i32
      %46 = vector.broadcast %c0_i32_28 : i32 to vector<1x2x128xi32>
      %47 = arith.cmpi eq, %45, %46 : vector<1x2x128xi32>
      %48 = vector.broadcast %39 : f32 to vector<1x2x128xf32>
      %49 = vector.broadcast %44 : f32 to vector<1x2x128xf32>
      %50 = arith.select %47, %48, %49 : vector<1x2x128xi1>, vector<1x2x128xf32>
      %c0_29 = arith.constant 0 : index
      %c0_30 = arith.constant 0 : index
      %c0_31 = arith.constant 0 : index
      %51 = vector.load %arg6[%c0_29, %c0_30, %c0_31] : memref<1x2x128xf32, #tpu.memory_space<vmem>>, vector<1x2x128xf32>
      tpu.vector_store %arg6[%c0_29, %c0_30, %c0_31], %50 {strides = array<i32>} : memref<1x2x128xf32, #tpu.memory_space<vmem>>, vector<1x2x128xf32>,
    } else {
    }
    return
  }
  func.func @transform_0(%arg0: i32, %arg1: i32) -> (i32, i32) {
    %c1_i32 = arith.constant 1 : i32
    %0 = arith.muli %arg0, %c1_i32 : i32
    %1 = arith.addi %0, %arg1 : i32
    %c0_i32 = arith.constant 0 : i32
    %2 = arith.minsi %1, %c0_i32 : i32
    %c0_i32_0 = arith.constant 0 : i32
    %c0_i32_1 = arith.constant 0 : i32
    return %2, %c0_i32_0 : i32, i32
  }
  func.func @transform_1(%arg0: i32, %arg1: i32) -> (i32, i32) {
    %c1_i32 = arith.constant 1 : i32
    %0 = arith.muli %arg0, %c1_i32 : i32
    %1 = arith.addi %0, %arg1 : i32
    %c0_i32 = arith.constant 0 : i32
    %2 = arith.minsi %1, %c0_i32 : i32
    %c0_i32_0 = arith.constant 0 : i32
    %c0_i32_1 = arith.constant 0 : i32
    return %2, %c0_i32_0 : i32, i32
  }
  func.func @transform_2(%arg0: i32, %arg1: i32) -> (i32, i32) {
    %c1_i32 = arith.constant 1 : i32
    %0 = arith.muli %arg0, %c1_i32 : i32
    %1 = arith.addi %0, %arg1 : i32
    %c0_i32 = arith.constant 0 : i32
    %2 = arith.minsi %1, %c0_i32 : i32
    %c0_i32_0 = arith.constant 0 : i32
    %c0_i32_1 = arith.constant 0 : i32
    return %2, %c0_i32_0 : i32, i32
  }
  func.func @transform_3(%arg0: i32, %arg1: i32) -> (i32, i32) {
    %c1_i32 = arith.constant 1 : i32
    %0 = arith.muli %arg0, %c1_i32 : i32
    %1 = arith.addi %0, %arg1 : i32
    %c0_i32 = arith.constant 0 : i32
    %2 = arith.minsi %1, %c0_i32 : i32
    %c0_i32_0 = arith.constant 0 : i32
    %c0_i32_1 = arith.constant 0 : i32
    return %2, %c0_i32_0 : i32, i32
  }
  func.func @transform_4(%arg0: i32, %arg1: i32) -> (i32, i32, i32) {
    %c0_i32 = arith.constant 0 : i32
    %c0_i32_0 = arith.constant 0 : i32
    %c0_i32_1 = arith.constant 0 : i32
    return %arg0, %c0_i32, %c0_i32_0 : i32, i32, i32
  }
}

</mosaic_0001>

<bundles_post_ra>
// kernel: tpu_custom_call.1
= control target key start
LH: loop header
LB: loop body
LE: loop exit
PB: predicated region body
PF: predicated region fallthrough
CT: control target
= control target key end

     0   :  { %9 = vsyncpa [#allocation5], 0  ;;  %s386_s0 = inlined_call_operand.hbm [shape: f32[2,16], index: 0, kind: input, shape index: {}]   ;;  %s387_s1 = inlined_call_operand.hbm [shape: f32[2,16], index: 1, kind: input, shape index: {}]   ;;  %s388_s2 = inlined_call_operand.hbm [shape: f32[2,16], index: 2, kind: input, shape index: {}]   ;;  %s389_s3 = inlined_call_operand.vmem [shape: f32[2,16], index: 3, kind: input, shape index: {}]   ;;  %s390_s4 = inlined_call_operand.hbm [shape: f32[1,2,128], index: 4, kind: output, shape index: {}]  }
   0x1   :  { %10 = vsyncpa [#allocation8], 0  ;;  %s38_s17 = sshll.u32 %s387_s1, 4  ;;  %s39_s17 = int_to_ptr.hbm [resolvable:$true] %s38_s17 }
   0x2   :  { %11 = vsyncpa [#allocation6], 0  ;;  %s333_s18 = smov [#allocation7]   ;;  %s22_s22 = sshll.u32 %s386_s0, 4  ;;  %s23_s22 = int_to_ptr.hbm [resolvable:$true] %s22_s22 }
   0x3   :  { %s40_s19 = sshll.u32 %s333_s18, 4  ;;  %s334_s23 = smov [#allocation4]   ;;  %s41_s19 = int_to_ptr.vmem [resolvable:$true] %s40_s19 }
   0x4   :  { %43 = dma.hbm_to_vmem [thread:$0]  %s39_s17, 32, %s41_s19, [#allocation8]  }
   0x5   :  { %s24_s24 = sshll.u32 %s334_s23, 4  ;;  %s54_s27 = sshll.u32 %s388_s2, 4  ;;  %s25_s24 = int_to_ptr.vmem [resolvable:$true] %s24_s24  ;;  %s55_s27 = int_to_ptr.hbm [resolvable:$true] %s54_s27 }
   0x6   :  { %27 = dma.hbm_to_vmem [thread:$0]  %s23_s22, 32, %s25_s24, [#allocation5]  }
   0x7   :  { %s335_s1 = smov [#allocation9]  }
   0x8   :  { %s56_s28 = sshll.u32 %s335_s1, 4  ;;  %s57_s28 = int_to_ptr.vmem [resolvable:$true] %s56_s28 }
   0x9   :  { %59 = dma.hbm_to_vmem [thread:$0]  %s55_s27, 32, %s57_s28, [#allocation8]  }
   0xa   :  { %327 = dma.done.wait [#allocation5], 32  }
   0xb   :  { %328 = vsyncadd [#allocation5], 4294967264 }
   0xc   :  { %329 = dma.done.wait [#allocation8], 64  }
   0xd   :  { %330 = vsyncadd [#allocation8], 4294967232  ;;  %vm114_vm0 = vcmask 122880   ;;  %v336_v0 = vmov 0.0   ;;  %v118_v1 = vld [vmem:[#allocation7] sm:$0x3]  ;;  %v181_v54 = vlaneseq }
   0xe   :  { %115 = vst.msk [vmem:[#allocation2] sm:$0x1] %vm114_vm0, %v336_v0  ;;  %v120_v2 = vld [vmem:[%s389_s3] sm:$0x3]  ;;  %v121_v3 = vmul.f32 1.4142135, %v118_v1 }
   0xf   :  { %116 = vst.msk [vmem:[#allocation3] sm:$0x1] %vm114_vm0, %v336_v0  ;;  %vm135_vm1 = vcmask 123904   ;;  %v117_v8 = vld [vmem:[#allocation4] sm:$0x3]  ;;  %v182_v55 = vshrl.u32 %v181_v54, 7 }
  0x10   :  { %v147_v4 = vsel %vm135_vm1, %v120_v2, 0.0  ;;  %v122_v5 = vadd.f32 1e-09, %v121_v3  ;;  %v119_v9 = vld [vmem:[#allocation9] sm:$0x3]  ;;  %s337_s3 = smov [#allocation10]  }
  0x11   :  { %v148_v6 = vrot.slane %v147_v4, 4  ;;  %v129_v12 = vsub.f32 %v119_v9, %v117_v8  ;;  %s193_s29 = sshll.u32 %s337_s3, 4  ;;  %s195_s7 = sshll.u32 %s390_s4, 4  ;;  %vm183_vm2 = vcmp.eq.s32.totalorder %v182_v55, 0  ;;  %s194_s29 = int_to_ptr.vmem [resolvable:$true] %s193_s29  ;;  %s196_s7 = int_to_ptr.hbm [resolvable:$true] %s195_s7 }
  0x12   :  { %227 = vrcp.f32 %v122_v5 }
  0x13   :  { %v149_v7 = vadd.f32 %v148_v6, %v147_v4  ;;  %229 = vlog2.f32 %v118_v1  ;;  %v130_v20 = vand.u32 2147483647, %v129_v12 }
  0x15   :  { %v150_v10 = vrot.slane %v149_v7, 2  ;;  %v134_v33 = vld [vmem:[#allocation2] sm:$0x1] }
  0x16   :  { %v146_v16 = vld [vmem:[#allocation3] sm:$0x1] }
  0x17   :  { %v151_v11 = vadd.f32 %v150_v10, %v149_v7 }
  0x18   :  { %v228_v13 = vpop.eup %227 }
  0x19   :  { %v152_v14 = vrot.slane %v151_v11, 1  ;;  %v124_v15 = vmul.f32 %v228_v13, %v122_v5  ;;  %v230_v17 = vpop.eup %229 }
  0x1a   :  { %v128_v23 = vmul.f32 0.6931472, %v230_v17 }
  0x1b   :  { %v153_v18 = vadd.f32 %v152_v14, %v151_v11  ;;  %v125_v19 = vsub.f32 2.0, %v124_v15 }
  0x1d   :  { %v154_v21 = vadd.f32 %v153_v18, %v146_v16  ;;  %v126_v22 = vmul.f32 %v228_v13, %v125_v19 }
  0x1f   :  { %155 = vst.msk [vmem:[#allocation3] sm:$0x1] %vm114_vm0, %v154_v21  ;;  %v131_v24 = vmul.f32 %v130_v20, %v126_v22 }
  0x21   :  { %v132_v25 = vadd.f32 %v131_v24, %v128_v23 }
  0x23   :  { %v133_v26 = vmul.f32 %v132_v25, %v120_v2 }
  0x25   :  { %v136_v27 = vsel %vm135_vm1, %v133_v26, 0.0 }
  0x26   :  { %v137_v28 = vrot.slane %v136_v27, 4  ;;  %v170_v38 = vld [vmem:[#allocation3] sm:$0x1] }
  0x27   :  { %v171_v39 = vsel %vm114_vm0, %v170_v38, 0.0 }
  0x28   :  { %v138_v29 = vadd.f32 %v137_v28, %v136_v27 }
  0x2a   :  { %v139_v30 = vrot.slane %v138_v29, 2 }
  0x2c   :  { %v140_v31 = vadd.f32 %v139_v30, %v138_v29 }
  0x2e   :  { %v141_v32 = vrot.slane %v140_v31, 1 }
  0x30   :  { %v142_v34 = vadd.f32 %v141_v32, %v140_v31 }
  0x32   :  { %v143_v35 = vadd.f32 %v142_v34, %v134_v33 }
  0x34   :  { %145 = vst.msk [vmem:[#allocation2] sm:$0x1] %vm114_vm0, %v143_v35 }
  0x3b   :  { %v159_v36 = vld [vmem:[#allocation2] sm:$0x1] }
  0x3c   :  { %v160_v37 = vsel %vm114_vm0, %v159_v36, 0.0 }
  0x3d   :  { %161 = vadd.xlane.f32.xlu0 %v160_v37 }
  0x45   :  { %172 = vadd.xlane.f32.xlu0 %v171_v39 }
  0xb0   :  { %v162_v40 = vpop.xlane.xlu0 %161 }
  0xb1   :  { %v163_v41 = vrot.slane %v162_v40, 4 }
  0xb3   :  { %v164_v42 = vadd.f32 %v163_v41, %v162_v40 }
  0xb5   :  { %v165_v43 = vrot.slane %v164_v42, 2 }
  0xb7   :  { %v166_v44 = vadd.f32 %v165_v43, %v164_v42 }
  0xb8   :  { %v173_v45 = vpop.xlane.xlu0 %172 }
  0xb9   :  { %v174_v46 = vrot.slane %v173_v45, 4  ;;  %v167_v47 = vrot.slane %v166_v44, 1 }
  0xbb   :  { %v175_v48 = vadd.f32 %v174_v46, %v173_v45  ;;  %v168_v49 = vadd.f32 %v167_v47, %v166_v44 }
  0xbd   :  { %v176_v50 = vrot.slane %v175_v48, 2  ;;  %218 = vpush %v168_v49 }
  0xbf   :  { %v177_v51 = vadd.f32 %v176_v50, %v175_v48 }
  0xc1   :  { %v178_v52 = vrot.slane %v177_v51, 1 }
  0xc3   :  { %v179_v53 = vadd.f32 %v178_v52, %v177_v51 }
  0xc5   :  { %220 = vpush %v179_v53 }
  0xee   :  { %s219_s30 = spop %218 }
  0xef   :  { %v184_v56 = vstv %s219_s30 }
  0xf6   :  { %s221_s8 = spop %220 }
  0xf7   :  { %v185_v57 = vstv %s221_s8 }
  0xf8   :  { %v186_v58 = vsel %vm183_vm2, %v184_v56, %v185_v57 }
  0xf9   :  { %187 = vst [vmem:[#allocation10] sm:$0x3] %v186_v58 }
  0xfa   :  { %198 = dma.vmem_to_hbm [thread:$0]  %s194_s29, 32, %s196_s7, [#allocation6]  }
  0xfb   :  { %331 = dma.done.wait [#allocation6], 32  }
  0xfc   :  { %332 = vsyncadd [#allocation6], 4294967264 }
  0xfd   :  { %203 = vsyncpa [#allocation5], 1 }
  0xfe   :  { %204 = vsyncpa [#allocation8], 1 }
  0xff   :  { %205 = vsyncpa [#allocation6], 1 }

</bundles_post_ra>
